<compile_context>
chip_gen: v7x
topology: tpu7x:2x2x1
jax: 0.10.0
libtpu: 0.0.40
codegen_flags: <defaults>
</compile_context>

<pallas_src>
import math

import jax
import jax.numpy as jnp
from jax.experimental import pallas as pl
from jax.experimental.pallas import tpu as pltpu

NUM_CHANNELS = 4
NUM_DEGREES = 4
F_OUT = NUM_DEGREES * NUM_CHANNELS      # Fiber(1, 16).n_features = 16
DIM = 128                               # ij / x embedding dim
CAT = F_OUT + DIM                       # 144
IJ_DIM = 21
IN_PACK = 64                            # packed activation lanes: hr|hc|ij|0-pad
OUT_W = 128                             # single lane-dense output slab
PRED_LANE = 24                          # spare lane carrying pred (lanes 0:21 = sigmoid(y))


def _round_up(x, m):
    return (x + m - 1) // m * m


def _choose_tile(B, tb):
    """Row-tile size.

    Guarantees >= 2 grid steps when B > 16 so dimension_semantics=("parallel",)
    can shard the batch axis across both v7x TensorCores; otherwise uses the
    biggest tile <= tb (default 2048) so single-core v5e/v6e pay few per-step
    pipeline overheads and the activation/output DMAs are roofline-sized.
    """
    Bp8 = _round_up(B, 8)
    if Bp8 <= 16:
        return Bp8
    half = _round_up((Bp8 + 1) // 2, 8)
    return max(8, min(_round_up(tb, 8), half))


# --------------------------------------------------------------------------
# kernel
# --------------------------------------------------------------------------
def _strain_head_kernel(
    act_ref,        # [TB, 64]  f32 : lanes 0:16 hr, 16:32 hc, 32:53 ij, rest 0
    w_ij1_ref,      # [64, 128]      : cw_ij1 on packed-input rows 32:53, rest 0
    w128_ref,       # [3, 128, 128]  : 0=cw_ij2, 1=rw_e1 (rows 0:21, rest 0), 2=rw_e2
    w_cat_in_ref,   # [2, 64, 144]   : 0=cw_m1[:16] at rows 16:32, 1=rw_m1[:16] at rows 0:16
    w_cat_e_ref,    # [2, 128, 144]  : 0=cw_m1[16:], 1=rw_m1[16:]
    w_out_ref,      # [2, 144, 128] f32 : 0=cw_m2 (cols 0:21), 1=rw_m2 (col PRED_LANE)
    b128_ref,       # [8, 128] f32   : cb_ij1, cb_ij2, cb_m2(pad), rb_e1, rb_e2, rb_m2(@24), 0, 0
    b144_ref,       # [2, 144] f32   : cb_m1, rb_m1
    out_ref,        # [TB, 128] f32  : lanes 0:21 sigmoid(y), lane 24 pred
):
    f32 = jnp.float32

    def dot(a, w):
        # Cast the activation to the weight's (possibly bf16) dtype at the MXU
        # input only; accumulate in f32.
        return jnp.dot(a.astype(w.dtype), w, preferred_element_type=f32)

    x_in = act_ref[...]                                   # f32 [TB, 64]

    # ---------------- MLPClass ----------------
    # ijemb: Linear(21,128) -> ReLU -> Linear(128,128)   (zero rows absorb hr/hc lanes)
    e = dot(x_in, w_ij1_ref[...]) + b128_ref[0:1, :]
    e = jnp.maximum(e, 0.0)
    e = dot(e, w128_ref[0]) + b128_ref[1:2, :]

    # mlp[0] on cat([hc, e]):  packed @ Wc_in  +  e @ Wc_e  + b
    t = dot(x_in, w_cat_in_ref[0]) + dot(e, w_cat_e_ref[0]) + b144_ref[0:1, :]
    t = jnp.maximum(t, 0.0)                               # mlp[1]: ReLU
    y = dot(t, w_out_ref[0]) + b128_ref[2:3, :]           # mlp[2]; lanes 21: stay 0

    # teacher_forcing=False gating (f32: 10x amplifies rounding; w_out is f32)
    x_gate = jax.nn.sigmoid(10.0 * y)                     # padded lanes -> 0.5 (killed by zero rw_e1 rows)

    # ---------------- MLPReg ----------------
    xe = dot(x_gate, w128_ref[1]) + b128_ref[3:4, :]
    xe = jnp.maximum(xe, 0.0)
    xe = dot(xe, w128_ref[2]) + b128_ref[4:5, :]

    h = dot(x_in, w_cat_in_ref[1]) + dot(xe, w_cat_e_ref[1]) + b144_ref[1:2, :]
    h = jnp.maximum(h, 0.0)
    pred = dot(h, w_out_ref[1]) + b128_ref[5:6, :]        # nonzero only in lane PRED_LANE

    # single lane-dense [TB, 128] slab: one full-width unmasked store,
    # half the HBM writeback of the previous 256-lane layout.
    lane = jax.lax.broadcasted_iota(jnp.int32, y.shape, 1)
    out_ref[...] = jnp.where(lane == PRED_LANE, pred, jax.nn.sigmoid(y))


# --------------------------------------------------------------------------
# wrapper
# --------------------------------------------------------------------------
def strain_tensor_net_head(hr, hc, ij_index, packed_params, *, tb=2048):
    """Fused MLP head of StrainTensorNet (teacher_forcing=False path).

    Returns (pred [B,1], sigmoid(y) [B,21]).
    """
    B = hr.shape[0]
    TB = _choose_tile(B, tb)
    Bp = _round_up(B, TB)

    # host-side packing: one activation slab, zero-padded rows/lanes
    act = jnp.concatenate(
        [hr.astype(jnp.float32), hc.astype(jnp.float32), ij_index.astype(jnp.float32)],
        axis=-1)                                            # [B, 53]
    act = jnp.pad(act, ((0, Bp - B), (0, IN_PACK - act.shape[1])))

    args = (act,) + tuple(packed_params)

    def const_spec(p):
        # Weights/biases never change across grid steps: constant index_map
        # keeps them VMEM-resident, Buffered(1) drops the second buffer.
        nd = p.ndim
        return pl.BlockSpec(p.shape, lambda i, _nd=nd: (0,) * _nd,
                            pipeline_mode=pl.Buffered(buffer_count=1))

    in_specs = [pl.BlockSpec((TB, IN_PACK), lambda i: (i, 0))] + [
        const_spec(p) for p in packed_params]
    out_spec = pl.BlockSpec((TB, OUT_W), lambda i: (i, 0))

    # advisory cost hint so XLA can overlap this tiny head with backbone work
    weight_bytes = sum(int(p.size) * p.dtype.itemsize for p in packed_params)
    flops_per_row = 2 * (IN_PACK * DIM + DIM * DIM           # class ijemb
                         + 2 * IN_PACK * CAT + 2 * DIM * CAT  # the two cat matmuls
                         + 2 * CAT * DIM                      # the two output matmuls
                         + 2 * DIM * DIM)                     # reg emb
    cost = pl.CostEstimate(
        flops=int(Bp * flops_per_row),
        transcendentals=int(Bp * 2 * DIM),
        bytes_accessed=int(Bp * (IN_PACK + OUT_W) * 4 + weight_bytes))

    out = pl.pallas_call(
        _strain_head_kernel,
        out_shape=jax.ShapeDtypeStruct((Bp, OUT_W), jnp.float32),
        grid_spec=pltpu.PrefetchScalarGridSpec(
            num_scalar_prefetch=0,
            grid=(Bp // TB,),
            in_specs=in_specs,
            out_specs=out_spec,
        ),
        compiler_params=pltpu.CompilerParams(
            dimension_semantics=("parallel",)),
        cost_estimate=cost,
    )(*args)

    pred = out[:B, PRED_LANE:PRED_LANE + 1]
    sig_y = out[:B, 0:IJ_DIM]
    return pred, sig_y


# --------------------------------------------------------------------------
# parameters (PyTorch-default-style init; W stored as [in, out], b as [out])
# --------------------------------------------------------------------------
def _linear_params(key, fan_in, fan_out):
    kw, kb = jax.random.split(key)
    bound = 1.0 / math.sqrt(fan_in)
    w = jax.random.uniform(kw, (fan_in, fan_out), jnp.float32, -bound, bound)
    b = jax.random.uniform(kb, (fan_out,), jnp.float32, -bound, bound)
    return w, b


def make_params(key):
    keys = jax.random.split(key, 8)
    raw = {}
    raw["cw_ij1"], raw["cb_ij1"] = _linear_params(keys[0], IJ_DIM, DIM)
    raw["cw_ij2"], raw["cb_ij2"] = _linear_params(keys[1], DIM, DIM)
    raw["cw_m1"], raw["cb_m1"] = _linear_params(keys[2], CAT, CAT)
    raw["cw_m2"], raw["cb_m2"] = _linear_params(keys[3], CAT, IJ_DIM)
    raw["rw_e1"], raw["rb_e1"] = _linear_params(keys[4], IJ_DIM, DIM)
    raw["rw_e2"], raw["rb_e2"] = _linear_params(keys[5], DIM, DIM)
    raw["rw_m1"], raw["rb_m1"] = _linear_params(keys[6], CAT, CAT)
    raw["rw_m2"], raw["rb_m2"] = _linear_params(keys[7], CAT, 1)
    return raw


def pack_params(raw, dtype=jnp.bfloat16):
    """Pack 16 small tensors into 5 stacked weight arrays + 2 bias arrays.

    Weight rows/cols are zero-padded so the kernel never slices/concats lanes.
    `dtype` (default bf16 for MXU throughput) applies to the weight operands
    EXCEPT the final-layer stack `w_out` ([cw_m2, rw_m2]), which stays f32:
    cw_m2 produces y whose 10x gate amplifies rounding.  Biases stay f32 and
    all accumulation/elementwise math is f32 in-kernel.
    """
    w_ij1 = jnp.zeros((IN_PACK, DIM), jnp.float32).at[32:32 + IJ_DIM, :].set(raw["cw_ij1"])

    # INVARIANT (gate correctness): rows IJ_DIM: of rw_e1_pad MUST stay exactly
    # zero.  Padded lanes of y are 0 -> sigmoid(10*0)=0.5 in x_gate, and only
    # these zero weight rows keep that 0.5 out of the reg branch.  Casting to
    # bf16 preserves exact zeros, so the invariant survives the cast below.
    rw_e1_pad = jnp.zeros((DIM, DIM), jnp.float32).at[0:IJ_DIM, :].set(raw["rw_e1"])
    w128 = jnp.stack([raw["cw_ij2"], rw_e1_pad, raw["rw_e2"]], axis=0)

    wc_m1_in = jnp.zeros((IN_PACK, CAT), jnp.float32).at[16:32, :].set(raw["cw_m1"][:F_OUT])
    wr_m1_in = jnp.zeros((IN_PACK, CAT), jnp.float32).at[0:16, :].set(raw["rw_m1"][:F_OUT])
    w_cat_in = jnp.stack([wc_m1_in, wr_m1_in], axis=0)

    w_cat_e = jnp.stack([raw["cw_m1"][F_OUT:], raw["rw_m1"][F_OUT:]], axis=0)

    cw_m2_pad = jnp.zeros((CAT, DIM), jnp.float32).at[:, 0:IJ_DIM].set(raw["cw_m2"])
    # rw_m2 routed straight into output lane PRED_LANE -> pred lands in the
    # packed output slab with zero in-kernel lane movement.
    rw_m2_pad = jnp.zeros((CAT, DIM), jnp.float32).at[:, PRED_LANE:PRED_LANE + 1].set(raw["rw_m2"])
    w_out = jnp.stack([cw_m2_pad, rw_m2_pad], axis=0)       # stays f32 (see docstring)

    b128 = jnp.zeros((8, DIM), jnp.float32)
    b128 = b128.at[0].set(raw["cb_ij1"]).at[1].set(raw["cb_ij2"])
    b128 = b128.at[2, 0:IJ_DIM].set(raw["cb_m2"])
    b128 = b128.at[3].set(raw["rb_e1"]).at[4].set(raw["rb_e2"])
    b128 = b128.at[5, PRED_LANE:PRED_LANE + 1].set(raw["rb_m2"])
    b144 = jnp.stack([raw["cb_m1"], raw["rb_m1"]], axis=0)

    return (w_ij1.astype(dtype), w128.astype(dtype), w_cat_in.astype(dtype),
            w_cat_e.astype(dtype), w_out, b128, b144)


# --------------------------------------------------------------------------
# pure-JAX reference (matches PyTorch forward with teacher_forcing=False)
# --------------------------------------------------------------------------
def _reference(hr, hc, ij, raw):
    e = jnp.maximum(ij @ raw["cw_ij1"] + raw["cb_ij1"], 0.0) @ raw["cw_ij2"] + raw["cb_ij2"]
    t = jnp.maximum(jnp.concatenate([hc, e], -1) @ raw["cw_m1"] + raw["cb_m1"], 0.0)
    y = t @ raw["cw_m2"] + raw["cb_m2"]
    x = jax.nn.sigmoid(10.0 * y)
    xe = jnp.maximum(x @ raw["rw_e1"] + raw["rb_e1"], 0.0) @ raw["rw_e2"] + raw["rb_e2"]
    h = jnp.maximum(jnp.concatenate([hr, xe], -1) @ raw["rw_m1"] + raw["rb_m1"], 0.0)
    pred = h @ raw["rw_m2"] + raw["rb_m2"]
    return pred, jax.nn.sigmoid(y)


if __name__ == "__main__":
    key = jax.random.PRNGKey(0)
    k_hr, k_hc, k_ij, k_p = jax.random.split(key, 4)

    B = 8  # number of pooled graphs
    hr = jax.random.normal(k_hr, (B, F_OUT), jnp.float32)        # GMaxPooling output (reg branch)
    hc = jax.random.normal(k_hc, (B, F_OUT), jnp.float32)        # GMaxPooling output (class branch)
    ij_index = jax.random.normal(k_ij, (B, IJ_DIM), jnp.float32)

    raw = make_params(k_p)

    # ---- f32 weight pack: tight numerical check ----
    packed_f32 = pack_params(raw, dtype=jnp.float32)
    pred, sig_y = strain_tensor_net_head(hr, hc, ij_index, packed_f32)
    jax.block_until_ready((pred, sig_y))
    pred_ref, sig_y_ref = _reference(hr, hc, ij_index, raw)
    assert pred.shape == (B, 1) and sig_y.shape == (B, IJ_DIM)
    assert jnp.allclose(pred, pred_ref, atol=1e-4, rtol=1e-4)
    assert jnp.allclose(sig_y, sig_y_ref, atol=1e-5, rtol=1e-4)

    # ---- multi-step batch grid (B not a multiple of the tile), f32 pack ----
    B2 = 40
    hr2 = jax.random.normal(jax.random.PRNGKey(1), (B2, F_OUT), jnp.float32)
    hc2 = jax.random.normal(jax.random.PRNGKey(2), (B2, F_OUT), jnp.float32)
    ij2 = jax.random.normal(jax.random.PRNGKey(3), (B2, IJ_DIM), jnp.float32)
    pred2, sig_y2 = strain_tensor_net_head(hr2, hc2, ij2, packed_f32, tb=16)   # grid=(3,)
    pred2_ref, sig_y2_ref = _reference(hr2, hc2, ij2, raw)
    assert jnp.allclose(pred2, pred2_ref, atol=1e-4, rtol=1e-4)
    assert jnp.allclose(sig_y2, sig_y2_ref, atol=1e-5, rtol=1e-4)

    # ---- default bf16 mixed pack (w_out kept f32); default tile gives a
    #      2-step "parallel" grid at B2=40 (v7x megacore path).  Loose
    #      tolerance check against the f32 reference (bf16 MXU weight
    #      rounding, f32 accumulation). ----
    packed_bf16 = pack_params(raw)
    pred_b, sig_y_b = strain_tensor_net_head(hr2, hc2, ij2, packed_bf16)
    jax.block_until_ready((pred_b, sig_y_b))
    assert pred_b.shape == (B2, 1) and sig_y_b.shape == (B2, IJ_DIM)
    assert jnp.allclose(pred_b, pred2_ref, atol=3e-2, rtol=3e-2)
    assert jnp.allclose(sig_y_b, sig_y2_ref, atol=3e-2, rtol=3e-2)

    print("KERNEL_OK")
</pallas_src>

<mosaic_0001>
module attributes {stable_mosaic.version = 11 : i64} {
  func.func @_strain_head_kernel(%arg0: i32, %arg1: memref<8x64xf32, #tpu.memory_space<vmem>>, %arg2: memref<64x128xf32, #tpu.memory_space<vmem>>, %arg3: memref<3x128x128xf32, #tpu.memory_space<vmem>>, %arg4: memref<2x64x144xf32, #tpu.memory_space<vmem>>, %arg5: memref<2x128x144xf32, #tpu.memory_space<vmem>>, %arg6: memref<2x144x128xf32, #tpu.memory_space<vmem>>, %arg7: memref<8x128xf32, #tpu.memory_space<vmem>>, %arg8: memref<2x144xf32, #tpu.memory_space<vmem>>, %arg9: memref<8x128xf32, #tpu.memory_space<vmem>>) attributes {dimension_semantics = [#tpu.dimension_semantics<parallel>], iteration_bounds = array<i64: 1>, scalar_prefetch = 0 : i64, scratch_operands = 0 : i64, tpu.core_type = #tpu.core_type<tc>, window_params = [{transform_indices = @transform_0, window_bounds = array<i64: 8, 64>}, {pipeline_mode = #tpu.pipeline_mode<synchronous>, transform_indices = @transform_1, window_bounds = array<i64: 64, 128>}, {pipeline_mode = #tpu.pipeline_mode<synchronous>, transform_indices = @transform_2, window_bounds = array<i64: 3, 128, 128>}, {pipeline_mode = #tpu.pipeline_mode<synchronous>, transform_indices = @transform_3, window_bounds = array<i64: 2, 64, 144>}, {pipeline_mode = #tpu.pipeline_mode<synchronous>, transform_indices = @transform_4, window_bounds = array<i64: 2, 128, 144>}, {pipeline_mode = #tpu.pipeline_mode<synchronous>, transform_indices = @transform_5, window_bounds = array<i64: 2, 144, 128>}, {pipeline_mode = #tpu.pipeline_mode<synchronous>, transform_indices = @transform_6, window_bounds = array<i64: 8, 128>}, {pipeline_mode = #tpu.pipeline_mode<synchronous>, transform_indices = @transform_7, window_bounds = array<i64: 2, 144>}, {transform_indices = @transform_8, window_bounds = array<i64: 8, 128>}]} {
    %c0 = arith.constant 0 : index
    %c0_0 = arith.constant 0 : index
    %0 = vector.load %arg1[%c0, %c0_0] : memref<8x64xf32, #tpu.memory_space<vmem>>, vector<8x64xf32>
    %c0_1 = arith.constant 0 : index
    %c0_2 = arith.constant 0 : index
    %1 = vector.load %arg2[%c0_1, %c0_2] : memref<64x128xf32, #tpu.memory_space<vmem>>, vector<64x128xf32>
    %cst = arith.constant dense<0.000000e+00> : vector<8x128xf32>
    %2 = tpu.matmul %0, %1, %cst {dimension_numbers = #tpu.dot_dimension_numbers<[1], [0], [0], [1], [0, 0, 1, 1], [], []>} : vector<8x64xf32>, vector<64x128xf32>, vector<8x128xf32> -> vector<8x128xf32>
    %c0_3 = arith.constant 0 : index
    %c0_4 = arith.constant 0 : index
    %3 = vector.load %arg7[%c0_3, %c0_4] : memref<8x128xf32, #tpu.memory_space<vmem>>, vector<1x128xf32>
    %4 = vector.broadcast %3 : vector<1x128xf32> to vector<8x128xf32>
    %5 = arith.addf %2, %4 : vector<8x128xf32>
    %cst_5 = arith.constant 0.000000e+00 : f32
    %6 = vector.broadcast %cst_5 : f32 to vector<8x128xf32>
    %7 = arith.maximumf %5, %6 : vector<8x128xf32>
    %c0_6 = arith.constant 0 : index
    %c0_7 = arith.constant 0 : index
    %c0_8 = arith.constant 0 : index
    %8 = vector.load %arg3[%c0_6, %c0_7, %c0_8] : memref<3x128x128xf32, #tpu.memory_space<vmem>>, vector<1x128x128xf32>
    %9 = vector.shape_cast %8 : vector<1x128x128xf32> to vector<128x128xf32>
    %cst_9 = arith.constant dense<0.000000e+00> : vector<8x128xf32>
    %10 = tpu.matmul %7, %9, %cst_9 {dimension_numbers = #tpu.dot_dimension_numbers<[1], [0], [0], [1], [0, 0, 1, 1], [], []>} : vector<8x128xf32>, vector<128x128xf32>, vector<8x128xf32> -> vector<8x128xf32>
    %c1 = arith.constant 1 : index
    %c0_10 = arith.constant 0 : index
    %11 = vector.load %arg7[%c1, %c0_10] : memref<8x128xf32, #tpu.memory_space<vmem>>, vector<1x128xf32>
    %12 = vector.broadcast %11 : vector<1x128xf32> to vector<8x128xf32>
    %13 = arith.addf %10, %12 : vector<8x128xf32>
    %c0_11 = arith.constant 0 : index
    %c0_12 = arith.constant 0 : index
    %c0_13 = arith.constant 0 : index
    %14 = vector.load %arg4[%c0_11, %c0_12, %c0_13] : memref<2x64x144xf32, #tpu.memory_space<vmem>>, vector<1x64x144xf32>
    %15 = vector.shape_cast %14 : vector<1x64x144xf32> to vector<64x144xf32>
    %cst_14 = arith.constant dense<0.000000e+00> : vector<8x144xf32>
    %16 = tpu.matmul %0, %15, %cst_14 {dimension_numbers = #tpu.dot_dimension_numbers<[1], [0], [0], [1], [0, 0, 1, 1], [], []>} : vector<8x64xf32>, vector<64x144xf32>, vector<8x144xf32> -> vector<8x144xf32>
    %c0_15 = arith.constant 0 : index
    %c0_16 = arith.constant 0 : index
    %c0_17 = arith.constant 0 : index
    %17 = vector.load %arg5[%c0_15, %c0_16, %c0_17] : memref<2x128x144xf32, #tpu.memory_space<vmem>>, vector<1x128x144xf32>
    %18 = vector.shape_cast %17 : vector<1x128x144xf32> to vector<128x144xf32>
    %cst_18 = arith.constant dense<0.000000e+00> : vector<8x144xf32>
    %19 = tpu.matmul %13, %18, %cst_18 {dimension_numbers = #tpu.dot_dimension_numbers<[1], [0], [0], [1], [0, 0, 1, 1], [], []>} : vector<8x128xf32>, vector<128x144xf32>, vector<8x144xf32> -> vector<8x144xf32>
    %20 = arith.addf %16, %19 : vector<8x144xf32>
    %c0_19 = arith.constant 0 : index
    %c0_20 = arith.constant 0 : index
    %21 = vector.load %arg8[%c0_19, %c0_20] : memref<2x144xf32, #tpu.memory_space<vmem>>, vector<1x144xf32>
    %22 = vector.broadcast %21 : vector<1x144xf32> to vector<8x144xf32>
    %23 = arith.addf %20, %22 : vector<8x144xf32>
    %cst_21 = arith.constant 0.000000e+00 : f32
    %24 = vector.broadcast %cst_21 : f32 to vector<8x144xf32>
    %25 = arith.maximumf %23, %24 : vector<8x144xf32>
    %c0_22 = arith.constant 0 : index
    %c0_23 = arith.constant 0 : index
    %c0_24 = arith.constant 0 : index
    %26 = vector.load %arg6[%c0_22, %c0_23, %c0_24] : memref<2x144x128xf32, #tpu.memory_space<vmem>>, vector<1x144x128xf32>
    %27 = vector.shape_cast %26 : vector<1x144x128xf32> to vector<144x128xf32>
    %cst_25 = arith.constant dense<0.000000e+00> : vector<8x128xf32>
    %28 = tpu.matmul %25, %27, %cst_25 {dimension_numbers = #tpu.dot_dimension_numbers<[1], [0], [0], [1], [0, 0, 1, 1], [], []>} : vector<8x144xf32>, vector<144x128xf32>, vector<8x128xf32> -> vector<8x128xf32>
    %c2 = arith.constant 2 : index
    %c0_26 = arith.constant 0 : index
    %29 = vector.load %arg7[%c2, %c0_26] : memref<8x128xf32, #tpu.memory_space<vmem>>, vector<1x128xf32>
    %30 = vector.broadcast %29 : vector<1x128xf32> to vector<8x128xf32>
    %31 = arith.addf %28, %30 : vector<8x128xf32>
    %cst_27 = arith.constant 1.000000e+01 : f32
    %32 = vector.broadcast %cst_27 : f32 to vector<8x128xf32>
    %33 = arith.mulf %32, %31 : vector<8x128xf32>
    %34 = arith.negf %33 : vector<8x128xf32>
    %35 = math.exp %34 : vector<8x128xf32>
    %cst_28 = arith.constant 1.000000e+00 : f32
    %36 = vector.broadcast %cst_28 : f32 to vector<8x128xf32>
    %37 = arith.addf %36, %35 : vector<8x128xf32>
    %38 = arith.divf %36, %37 : vector<8x128xf32>
    %c1_29 = arith.constant 1 : index
    %c0_30 = arith.constant 0 : index
    %c0_31 = arith.constant 0 : index
    %39 = vector.load %arg3[%c1_29, %c0_30, %c0_31] : memref<3x128x128xf32, #tpu.memory_space<vmem>>, vector<1x128x128xf32>
    %40 = vector.shape_cast %39 : vector<1x128x128xf32> to vector<128x128xf32>
    %cst_32 = arith.constant dense<0.000000e+00> : vector<8x128xf32>
    %41 = tpu.matmul %38, %40, %cst_32 {dimension_numbers = #tpu.dot_dimension_numbers<[1], [0], [0], [1], [0, 0, 1, 1], [], []>} : vector<8x128xf32>, vector<128x128xf32>, vector<8x128xf32> -> vector<8x128xf32>
    %c3 = arith.constant 3 : index
    %c0_33 = arith.constant 0 : index
    %42 = vector.load %arg7[%c3, %c0_33] : memref<8x128xf32, #tpu.memory_space<vmem>>, vector<1x128xf32>
    %43 = vector.broadcast %42 : vector<1x128xf32> to vector<8x128xf32>
    %44 = arith.addf %41, %43 : vector<8x128xf32>
    %cst_34 = arith.constant 0.000000e+00 : f32
    %45 = vector.broadcast %cst_34 : f32 to vector<8x128xf32>
    %46 = arith.maximumf %44, %45 : vector<8x128xf32>
    %c2_35 = arith.constant 2 : index
    %c0_36 = arith.constant 0 : index
    %c0_37 = arith.constant 0 : index
    %47 = vector.load %arg3[%c2_35, %c0_36, %c0_37] : memref<3x128x128xf32, #tpu.memory_space<vmem>>, vector<1x128x128xf32>
    %48 = vector.shape_cast %47 : vector<1x128x128xf32> to vector<128x128xf32>
    %cst_38 = arith.constant dense<0.000000e+00> : vector<8x128xf32>
    %49 = tpu.matmul %46, %48, %cst_38 {dimension_numbers = #tpu.dot_dimension_numbers<[1], [0], [0], [1], [0, 0, 1, 1], [], []>} : vector<8x128xf32>, vector<128x128xf32>, vector<8x128xf32> -> vector<8x128xf32>
    %c4 = arith.constant 4 : index
    %c0_39 = arith.constant 0 : index
    %50 = vector.load %arg7[%c4, %c0_39] : memref<8x128xf32, #tpu.memory_space<vmem>>, vector<1x128xf32>
    %51 = vector.broadcast %50 : vector<1x128xf32> to vector<8x128xf32>
    %52 = arith.addf %49, %51 : vector<8x128xf32>
    %c1_40 = arith.constant 1 : index
    %c0_41 = arith.constant 0 : index
    %c0_42 = arith.constant 0 : index
    %53 = vector.load %arg4[%c1_40, %c0_41, %c0_42] : memref<2x64x144xf32, #tpu.memory_space<vmem>>, vector<1x64x144xf32>
    %54 = vector.shape_cast %53 : vector<1x64x144xf32> to vector<64x144xf32>
    %cst_43 = arith.constant dense<0.000000e+00> : vector<8x144xf32>
    %55 = tpu.matmul %0, %54, %cst_43 {dimension_numbers = #tpu.dot_dimension_numbers<[1], [0], [0], [1], [0, 0, 1, 1], [], []>} : vector<8x64xf32>, vector<64x144xf32>, vector<8x144xf32> -> vector<8x144xf32>
    %c1_44 = arith.constant 1 : index
    %c0_45 = arith.constant 0 : index
    %c0_46 = arith.constant 0 : index
    %56 = vector.load %arg5[%c1_44, %c0_45, %c0_46] : memref<2x128x144xf32, #tpu.memory_space<vmem>>, vector<1x128x144xf32>
    %57 = vector.shape_cast %56 : vector<1x128x144xf32> to vector<128x144xf32>
    %cst_47 = arith.constant dense<0.000000e+00> : vector<8x144xf32>
    %58 = tpu.matmul %52, %57, %cst_47 {dimension_numbers = #tpu.dot_dimension_numbers<[1], [0], [0], [1], [0, 0, 1, 1], [], []>} : vector<8x128xf32>, vector<128x144xf32>, vector<8x144xf32> -> vector<8x144xf32>
    %59 = arith.addf %55, %58 : vector<8x144xf32>
    %c1_48 = arith.constant 1 : index
    %c0_49 = arith.constant 0 : index
    %60 = vector.load %arg8[%c1_48, %c0_49] : memref<2x144xf32, #tpu.memory_space<vmem>>, vector<1x144xf32>
    %61 = vector.broadcast %60 : vector<1x144xf32> to vector<8x144xf32>
    %62 = arith.addf %59, %61 : vector<8x144xf32>
    %cst_50 = arith.constant 0.000000e+00 : f32
    %63 = vector.broadcast %cst_50 : f32 to vector<8x144xf32>
    %64 = arith.maximumf %62, %63 : vector<8x144xf32>
    %c1_51 = arith.constant 1 : index
    %c0_52 = arith.constant 0 : index
    %c0_53 = arith.constant 0 : index
    %65 = vector.load %arg6[%c1_51, %c0_52, %c0_53] : memref<2x144x128xf32, #tpu.memory_space<vmem>>, vector<1x144x128xf32>
    %66 = vector.shape_cast %65 : vector<1x144x128xf32> to vector<144x128xf32>
    %cst_54 = arith.constant dense<0.000000e+00> : vector<8x128xf32>
    %67 = tpu.matmul %64, %66, %cst_54 {dimension_numbers = #tpu.dot_dimension_numbers<[1], [0], [0], [1], [0, 0, 1, 1], [], []>} : vector<8x144xf32>, vector<144x128xf32>, vector<8x128xf32> -> vector<8x128xf32>
    %c5 = arith.constant 5 : index
    %c0_55 = arith.constant 0 : index
    %68 = vector.load %arg7[%c5, %c0_55] : memref<8x128xf32, #tpu.memory_space<vmem>>, vector<1x128xf32>
    %69 = vector.broadcast %68 : vector<1x128xf32> to vector<8x128xf32>
    %70 = arith.addf %67, %69 : vector<8x128xf32>
    %71 = tpu.iota {dimensions = array<i32: 1>} : vector<8x128xi32>
    %c24_i32 = arith.constant 24 : i32
    %72 = vector.broadcast %c24_i32 : i32 to vector<8x128xi32>
    %73 = arith.cmpi eq, %71, %72 : vector<8x128xi32>
    %74 = arith.negf %31 : vector<8x128xf32>
    %75 = math.exp %74 : vector<8x128xf32>
    %cst_56 = arith.constant 1.000000e+00 : f32
    %76 = vector.broadcast %cst_56 : f32 to vector<8x128xf32>
    %77 = arith.addf %76, %75 : vector<8x128xf32>
    %78 = arith.divf %76, %77 : vector<8x128xf32>
    %79 = arith.select %73, %70, %78 : vector<8x128xi1>, vector<8x128xf32>
    %c0_57 = arith.constant 0 : index
    %c0_58 = arith.constant 0 : index
    %80 = vector.load %arg9[%c0_57, %c0_58] : memref<8x128xf32, #tpu.memory_space<vmem>>, vector<8x128xf32>
    tpu.vector_store %arg9[%c0_57, %c0_58], %79 {strides = array<i32>} : memref<8x128xf32, #tpu.memory_space<vmem>>, vector<8x128xf32>,
    return
  }
  func.func @transform_0(%arg0: i32) -> (i32, i32) {
    %c0_i32 = arith.constant 0 : i32
    %c0_i32_0 = arith.constant 0 : i32
    return %arg0, %c0_i32 : i32, i32
  }
  func.func @transform_1(%arg0: i32) -> (i32, i32) {
    %c0_i32 = arith.constant 0 : i32
    %c0_i32_0 = arith.constant 0 : i32
    %c0_i32_1 = arith.constant 0 : i32
    return %c0_i32, %c0_i32_0 : i32, i32
  }
  func.func @transform_2(%arg0: i32) -> (i32, i32, i32) {
    %c0_i32 = arith.constant 0 : i32
    %c0_i32_0 = arith.constant 0 : i32
    %c0_i32_1 = arith.constant 0 : i32
    %c0_i32_2 = arith.constant 0 : i32
    return %c0_i32, %c0_i32_0, %c0_i32_1 : i32, i32, i32
  }
  func.func @transform_3(%arg0: i32) -> (i32, i32, i32) {
    %c0_i32 = arith.constant 0 : i32
    %c0_i32_0 = arith.constant 0 : i32
    %c0_i32_1 = arith.constant 0 : i32
    %c0_i32_2 = arith.constant 0 : i32
    return %c0_i32, %c0_i32_0, %c0_i32_1 : i32, i32, i32
  }
  func.func @transform_4(%arg0: i32) -> (i32, i32, i32) {
    %c0_i32 = arith.constant 0 : i32
    %c0_i32_0 = arith.constant 0 : i32
    %c0_i32_1 = arith.constant 0 : i32
    %c0_i32_2 = arith.constant 0 : i32
    return %c0_i32, %c0_i32_0, %c0_i32_1 : i32, i32, i32
  }
  func.func @transform_5(%arg0: i32) -> (i32, i32, i32) {
    %c0_i32 = arith.constant 0 : i32
    %c0_i32_0 = arith.constant 0 : i32
    %c0_i32_1 = arith.constant 0 : i32
    %c0_i32_2 = arith.constant 0 : i32
    return %c0_i32, %c0_i32_0, %c0_i32_1 : i32, i32, i32
  }
  func.func @transform_6(%arg0: i32) -> (i32, i32) {
    %c0_i32 = arith.constant 0 : i32
    %c0_i32_0 = arith.constant 0 : i32
    %c0_i32_1 = arith.constant 0 : i32
    return %c0_i32, %c0_i32_0 : i32, i32
  }
  func.func @transform_7(%arg0: i32) -> (i32, i32) {
    %c0_i32 = arith.constant 0 : i32
    %c0_i32_0 = arith.constant 0 : i32
    %c0_i32_1 = arith.constant 0 : i32
    return %c0_i32, %c0_i32_0 : i32, i32
  }
  func.func @transform_8(%arg0: i32) -> (i32, i32) {
    %c0_i32 = arith.constant 0 : i32
    %c0_i32_0 = arith.constant 0 : i32
    return %arg0, %c0_i32 : i32, i32
  }
}

</mosaic_0001>

<bundles_post_ra>
// kernel: tpu_custom_call.1
= control target key start
LH: loop header
LB: loop body
LE: loop exit
PB: predicated region body
PF: predicated region fallthrough
CT: control target
= control target key end

     0   :  { %13 = vsyncpa [#allocation3], 0  ;;  %s2289_s0 = inlined_call_operand.vmem [shape: f32[8,64], index: 0, kind: input, shape index: {}]   ;;  %s2290_s1 = inlined_call_operand.vmem [shape: f32[64,128], index: 1, kind: input, shape index: {}]   ;;  %s2291_s2 = inlined_call_operand.vmem [shape: f32[3,128,128], index: 2, kind: input, shape index: {}]   ;;  %s2292_s3 = inlined_call_operand.hbm [shape: f32[2,64,144], index: 3, kind: input, shape index: {}]   ;;  %s2293_s4 = inlined_call_operand.vmem [shape: f32[2,128,144], index: 4, kind: input, shape index: {}]   ;;  %s2294_s5 = inlined_call_operand.vmem [shape: f32[2,144,128], index: 5, kind: input, shape index: {}]   ;;  %s2295_s6 = inlined_call_operand.vmem [shape: f32[8,128], index: 6, kind: input, shape index: {}]   ;;  %s2296_s7 = inlined_call_operand.vmem [shape: f32[2,144], index: 7, kind: input, shape index: {}]   ;;  %s2297_s8 = inlined_call_operand.hbm [shape: f32[8,128], index: 8, kind: output, shape index: {}]  }
   0x1   :  { %14 = vsyncpa [#allocation4], 0  ;;  %s1632_s27 = smov [#allocation2]   ;;  %s1584_s9 = scalar_lea.hbm %s2292_s3, 4096 }
   0x2   :  { %s26_s28 = sshll.u32 %s1632_s27, 4  ;;  %p1585_p0 = scmp.ne.s32.totalorder %s2292_s3, %s1584_s9  ;;  %s27_s28 = int_to_ptr.vmem [resolvable:$true] %s26_s28 }
   0x3   :  { %p1588_p1 = scmp.lt.u32.totalorder %s1584_s9, %s2292_s3 }
   0x5   :  { %p1590_p2 = pnand %p1588_p1, %p1585_p0 }
   0x7   :  { %1593 = shalt.err (!%p1590_p2)
}
   0x8   :  { %s1594_s14 = scalar_lea.vmem %s27_s28, 4096  ;;  %p1599_p4 = scmp.lt.s32.totalorder %s27_s28, %s27_s28 }
   0x9   :  { %p1595_p3 = scmp.ne.s32.totalorder %s27_s28, %s1594_s14  ;;  %p1600_p5 = scmp.lt.s32.totalorder %s1594_s14, %s1594_s14 }
   0xb   :  { %p1601_p6 = por %p1600_p5, %p1599_p4 }
   0xd   :  { %p1602_p7 = pnand %p1601_p6, %p1595_p3 }
   0xf   :  { %1605 = shalt.err (!%p1602_p7)
}
  0x10   :  { %s1633_s15 = smov 256   ;;  %s1634_s16 = smov 16  }
  0x11   :  { %32 = dma.hbm_to_vmem [thread:$0]  %s2292_s3, 4096, %s27_s28, [#allocation3], %s1633_s15, %s1633_s15, %s1634_s16  }
  0x12   :  { %1628 = dma.done.wait [#allocation3], 4096  }
  0x13   :  { %1629 = vsyncadd [#allocation3], 4294963200  ;;  %v1635_v0 = vmov 0.0|0.0   ;;  %vm1636_vm0 = vmmov 0   ;;  %v1637_v1 = vmov 0.0   ;;  %v45_v2 = vld [vmem:[%s2290_s1] sm:$0xff] }
  0x14   :  { %1331 = vmatprep.subr.bf16.mxu0 %v1635_v0  ;;  %1223 = vmatprep.mubr.msk.f32.mxu0 %vm1636_vm0, %v1637_v1  ;;  %v46_v3 = vld [vmem:[%s2290_s1 + $0x8] sm:$0xff]  ;;  %v47_v4 = vld [vmem:[%s2290_s1 + $0x10] sm:$0xff]  ;;  %v48_v6 = vld [vmem:[%s2290_s1 + $0x18] sm:$0xff]  ;;  %vm58_vm1 = vcmask 523264   ;;  %vm453_vm2 = vcmask 130048   ;;  %s1638_s18 = smov [#allocation5]  }
  0x15   :  { %1343 = vmatprep.subr.bf16.mxu1 %v1635_v0  ;;  %1258 = vmatprep.mubr.msk.f32.mxu1 %vm1636_vm0, %v1637_v1  ;;  %v1332_v5 = vpack.c.bf16 %v46_v3, %v45_v2  ;;  %v1335_v7 = vpack.c.bf16 %v48_v6, %v47_v4  ;;  %v133_v8 = vld [vmem:[%s2291_s2] sm:$0xff]  ;;  %v134_v9 = vld [vmem:[%s2291_s2 + $0x8] sm:$0xff]  ;;  %v135_v10 = vld [vmem:[%s2291_s2 + $0x10] sm:$0xff]  ;;  %s1042_s19 = sshll.u32 %s1638_s18, 4  ;;  %s1043_s19 = int_to_ptr.vmem [resolvable:$true] %s1042_s19 }
  0x16   :  { %v49_v11 = vld [vmem:[%s2290_s1 + $0x20] sm:$0xff]  ;;  %v50_v12 = vld [vmem:[%s2290_s1 + $0x28] sm:$0xff]  ;;  %v1344_v13 = vpack.c.bf16 %v134_v9, %v133_v8  ;;  %v136_v14 = vld [vmem:[%s2291_s2 + $0x18] sm:$0xff]  ;;  %s1606_s20 = scalar_lea.vmem %s1043_s19, 128  ;;  %p1611_p9 = scmp.lt.s32.totalorder %s1043_s19, %s1043_s19 }
  0x17   :  { %1333 = vmatpush3.bf16.msra.mxu0 %v1332_v5  ;;  %v1347_v15 = vpack.c.bf16 %v136_v14, %v135_v10  ;;  %v1338_v16 = vpack.c.bf16 %v50_v12, %v49_v11  ;;  %v137_v17 = vld [vmem:[%s2291_s2 + $0x20] sm:$0xff]  ;;  %v138_v18 = vld [vmem:[%s2291_s2 + $0x28] sm:$0xff]  ;;  %v51_v19 = vld [vmem:[%s2290_s1 + $0x30] sm:$0xff]  ;;  %p1607_p8 = scmp.ne.s32.totalorder %s1043_s19, %s1606_s20  ;;  %p1612_p10 = scmp.lt.s32.totalorder %s1606_s20, %s1606_s20 }
  0x18   :  { %1334 = vmatprep.subr.bf16.mxu0 %v1635_v0  ;;  %1345 = vmatpush3.bf16.msra.mxu1 %v1344_v13  ;;  %v52_v20 = vld [vmem:[%s2290_s1 + $0x38] sm:$0xff]  ;;  %v1350_v21 = vpack.c.bf16 %v138_v18, %v137_v17  ;;  %v139_v23 = vld [vmem:[%s2291_s2 + $0x30] sm:$0xff]  ;;  %v1758_v26 = vld [vmem:[%s2289_s0] sm:$0xff] }
  0x19   :  { %1346 = vmatprep.subr.bf16.mxu1 %v1635_v0  ;;  %v1341_v22 = vpack.c.bf16 %v52_v20, %v51_v19  ;;  %v140_v24 = vld [vmem:[%s2291_s2 + $0x38] sm:$0xff]  ;;  %v141_v27 = vld [vmem:[%s2291_s2 + $0x40] sm:$0xff]  ;;  %v142_v28 = vld [vmem:[%s2291_s2 + $0x48] sm:$0xff]  ;;  %p1613_p11 = por %p1612_p10, %p1611_p9 }
  0x1a   :  { %v1353_v25 = vpack.c.bf16 %v140_v24, %v139_v23  ;;  %v1356_v29 = vpack.c.bf16 %v142_v28, %v141_v27  ;;  %v143_v30 = vld [vmem:[%s2291_s2 + $0x50] sm:$0xff]  ;;  %v144_v31 = vld [vmem:[%s2291_s2 + $0x58] sm:$0xff]  ;;  %v145_v33 = vld [vmem:[%s2291_s2 + $0x60] sm:$0xff] }
  0x1b   :  { %1336 = vmatpush3.bf16.msra.mxu0 %v1335_v7  ;;  %v1359_v32 = vpack.c.bf16 %v144_v31, %v143_v30  ;;  %v146_v34 = vld [vmem:[%s2291_s2 + $0x68] sm:$0xff]  ;;  %v147_v36 = vld [vmem:[%s2291_s2 + $0x70] sm:$0xff]  ;;  %v148_v37 = vld [vmem:[%s2291_s2 + $0x78] sm:$0xff]  ;;  %p1614_p12 = pnand %p1613_p11, %p1607_p8 }
  0x1c   :  { %1337 = vmatprep.subr.bf16.mxu0 %v1635_v0  ;;  %1348 = vmatpush3.bf16.msra.mxu1 %v1347_v15  ;;  %v1362_v35 = vpack.c.bf16 %v146_v34, %v145_v33  ;;  %v1365_v38 = vpack.c.bf16 %v148_v37, %v147_v36  ;;  %v241_v39 = vld [vmem:[%s2293_s4 + $0x8] sm:$0xff]  ;;  %v243_v40 = vld [vmem:[%s2293_s4 + $0x18] sm:$0xff]  ;;  %v240_v41 = vld [vmem:[%s2293_s4] sm:$0xff] }
  0x1d   :  { %1349 = vmatprep.subr.bf16.mxu1 %v1635_v0  ;;  %v1367_v42 = vpack.c.bf16 %v243_v40, %v241_v39  ;;  %v242_v43 = vld [vmem:[%s2293_s4 + $0x10] sm:$0xff]  ;;  %v245_v44 = vld [vmem:[%s2293_s4 + $0x28] sm:$0xff]  ;;  %v247_v45 = vld [vmem:[%s2293_s4 + $0x38] sm:$0xff] }
  0x1e   :  { %v1369_v46 = vpack.c.bf16 %v242_v43, %v240_v41  ;;  %v1371_v47 = vpack.c.bf16 %v247_v45, %v245_v44  ;;  %v244_v48 = vld [vmem:[%s2293_s4 + $0x20] sm:$0xff]  ;;  %v246_v49 = vld [vmem:[%s2293_s4 + $0x30] sm:$0xff]  ;;  %v249_v50 = vld [vmem:[%s2293_s4 + $0x48] sm:$0xff] }
  0x1f   :  { %1339 = vmatpush3.bf16.msra.mxu0 %v1338_v16  ;;  %v251_v51 = vld [vmem:[%s2293_s4 + $0x58] sm:$0xff]  ;;  %v1373_v52 = vpack.c.bf16 %v246_v49, %v244_v48  ;;  %v248_v54 = vld [vmem:[%s2293_s4 + $0x40] sm:$0xff]  ;;  %v250_v55 = vld [vmem:[%s2293_s4 + $0x50] sm:$0xff] }
  0x20   :  { %1340 = vmatprep.subr.bf16.mxu0 %v1635_v0  ;;  %1351 = vmatpush3.bf16.msra.mxu1 %v1350_v21  ;;  %v1375_v53 = vpack.c.bf16 %v251_v51, %v249_v50  ;;  %v253_v56 = vld [vmem:[%s2293_s4 + $0x68] sm:$0xff]  ;;  %v255_v57 = vld [vmem:[%s2293_s4 + $0x78] sm:$0xff]  ;;  %v1377_v58 = vpack.c.bf16 %v250_v55, %v248_v54  ;;  %v252_v60 = vld [vmem:[%s2293_s4 + $0x60] sm:$0xff] }
  0x21   :  { %1352 = vmatprep.subr.bf16.mxu1 %v1635_v0  ;;  %v1379_v59 = vpack.c.bf16 %v255_v57, %v253_v56  ;;  %v254_v61 = vld [vmem:[%s2293_s4 + $0x70] sm:$0xff]  ;;  %v257_v62 = vld [vmem:[%s2293_s4 + $0x88] sm:$0xff]  ;;  %v259_v63 = vld [vmem:[%s2293_s4 + $0x98] sm:$0xff] }
  0x22   :  { %v1381_v2 = vpack.c.bf16 %v254_v61, %v252_v60  ;;  %v1383_v3 = vpack.c.bf16 %v259_v63, %v257_v62  ;;  %v256_v4 = vld [vmem:[%s2293_s4 + $0x80] sm:$0xff]  ;;  %v258_v5 = vld [vmem:[%s2293_s4 + $0x90] sm:$0xff]  ;;  %v261_v6 = vld [vmem:[%s2293_s4 + $0xa8] sm:$0xff] }
  0x23   :  { %1342 = vmatpush3.bf16.msra.mxu0 %v1341_v22  ;;  %v263_v7 = vld [vmem:[%s2293_s4 + $0xb8] sm:$0xff]  ;;  %v1385_v8 = vpack.c.bf16 %v258_v5, %v256_v4  ;;  %v260_v10 = vld [vmem:[%s2293_s4 + $0xa0] sm:$0xff]  ;;  %v262_v11 = vld [vmem:[%s2293_s4 + $0xb0] sm:$0xff] }
  0x24   :  { %1354 = vmatpush3.bf16.msra.mxu1 %v1353_v25  ;;  %1368 = vmatprep.subr.bf16.mxu0 %v1367_v42  ;;  %v1387_v9 = vpack.c.bf16 %v263_v7, %v261_v6  ;;  %v265_v12 = vld [vmem:[%s2293_s4 + $0xc8] sm:$0xff]  ;;  %v267_v13 = vld [vmem:[%s2293_s4 + $0xd8] sm:$0xff]  ;;  %v1389_v14 = vpack.c.bf16 %v262_v11, %v260_v10  ;;  %v264_v16 = vld [vmem:[%s2293_s4 + $0xc0] sm:$0xff] }
  0x25   :  { %1355 = vmatprep.subr.bf16.mxu1 %v1635_v0  ;;  %v1391_v15 = vpack.c.bf16 %v267_v13, %v265_v12  ;;  %v266_v17 = vld [vmem:[%s2293_s4 + $0xd0] sm:$0xff]  ;;  %v269_v18 = vld [vmem:[%s2293_s4 + $0xe8] sm:$0xff]  ;;  %v271_v19 = vld [vmem:[%s2293_s4 + $0xf8] sm:$0xff] }
  0x26   :  { %1224 = vmatmul.mubr.msk.f32.vlgmr.msra.gmra.mrb[0].mxu0 %vm58_vm1, %v1758_v26  ;;  %v1393_v20 = vpack.c.bf16 %v266_v17, %v264_v16  ;;  %v1395_v21 = vpack.c.bf16 %v271_v19, %v269_v18  ;;  %v268_v22 = vld [vmem:[%s2293_s4 + $0xe0] sm:$0xff]  ;;  %v270_v23 = vld [vmem:[%s2293_s4 + $0xf0] sm:$0xff]  ;;  %v225_v31 = vld [vmem:[#allocation2 + $0x8] sm:$0xff] }
  0x27   :  { %336 = vmatprep.mubr.f32.mxu0 %v1637_v1  ;;  %1370 = vmatpush1.bf16.msra.mxu0 %v1369_v46  ;;  %v1397_v24 = vpack.c.bf16 %v270_v23, %v268_v22  ;;  %v1051_v25 = vld [vmem:[%s2295_s6] ss:$0 sm:$0xff]  ;;  %v432_v36 = vld [vmem:[%s2294_s5 + $0x10] sm:$0xff]  ;;  %v435_v41 = vld [vmem:[%s2294_s5 + $0x28] sm:$0xff] }
  0x28   :  { %1357 = vmatpush3.bf16.msra.mxu1 %v1356_v29  ;;  %1372 = vmatprep.subr.bf16.mxu0 %v1371_v47  ;;  %v430_v34 = vld [vmem:[%s2294_s5] sm:$0xff]  ;;  %v436_v43 = vld [vmem:[%s2294_s5 + $0x30] sm:$0xff]  ;;  %v437_v44 = vld [vmem:[%s2294_s5 + $0x38] sm:$0xff] }
  0x29   :  { %1358 = vmatprep.subr.bf16.mxu1 %v1635_v0  ;;  %v434_v40 = vld [vmem:[%s2294_s5 + $0x20] sm:$0xff]  ;;  %v1425_v45 = vpack.c.bf16 %v437_v44, %v436_v43  ;;  %v439_v47 = vld [vmem:[%s2294_s5 + $0x48] sm:$0xff]  ;;  %v440_v49 = vld [vmem:[%s2294_s5 + $0x50] sm:$0xff] }
  0x2a   :  { %v1422_v42 = vpack.c.bf16 %v435_v41, %v434_v40  ;;  %v438_v46 = vld [vmem:[%s2294_s5 + $0x40] sm:$0xff]  ;;  %v441_v50 = vld [vmem:[%s2294_s5 + $0x58] sm:$0xff]  ;;  %v226_v56 = vld [vmem:[#allocation2 + $0x10] sm:$0xff] }
  0x2b   :  { %1374 = vmatpush1.bf16.msra.mxu0 %v1373_v52  ;;  %v1428_v48 = vpack.c.bf16 %v439_v47, %v438_v46  ;;  %v1431_v51 = vpack.c.bf16 %v441_v50, %v440_v49  ;;  %v442_v52 = vld [vmem:[%s2294_s5 + $0x60] sm:$0xff]  ;;  %v230_v4 = vld [vmem:[#allocation2 + $0x30] sm:$0xff]  ;;  %v233_v5 = vld [vmem:[#allocation2 + $0x48] sm:$0xff] }
  0x2c   :  { %1360 = vmatpush3.bf16.msra.mxu1 %v1359_v32  ;;  %1376 = vmatprep.subr.bf16.mxu0 %v1375_v53  ;;  %v227_v32 = vld [vmem:[#allocation2 + $0x18] sm:$0xff]  ;;  %v443_v53 = vld [vmem:[%s2294_s5 + $0x68] sm:$0xff]  ;;  %v224_v55 = vld [vmem:[#allocation2] sm:$0xff] }
  0x2d   :  { %1361 = vmatprep.subr.bf16.mxu1 %v1635_v0  ;;  %v1399_v33 = vpack.c.bf16 %v227_v32, %v225_v31  ;;  %v1434_v54 = vpack.c.bf16 %v443_v53, %v442_v52  ;;  %v1053_v57 = vld [vmem:[%s2295_s6 + $0x1] ss:$0 sm:$0xff]  ;;  %v1401_v61 = vpack.c.bf16 %v226_v56, %v224_v55  ;;  %v235_v6 = vld [vmem:[#allocation2 + $0x58] sm:$0xff]  ;;  %v234_v10 = vld [vmem:[#allocation2 + $0x50] sm:$0xff] }
  0x2e   :  { %v237_v11 = vld [vmem:[#allocation2 + $0x68] sm:$0xff]  ;;  %v239_v12 = vld [vmem:[#allocation2 + $0x78] sm:$0xff]  ;;  %v238_v16 = vld [vmem:[#allocation2 + $0x70] sm:$0xff] }
  0x2f   :  { %1378 = vmatpush1.bf16.msra.mxu0 %v1377_v58  ;;  %v229_v58 = vld [vmem:[#allocation2 + $0x28] sm:$0xff]  ;;  %v444_v18 = vld [vmem:[%s2294_s5 + $0x70] sm:$0xff]  ;;  %v445_v19 = vld [vmem:[%s2294_s5 + $0x78] sm:$0xff] }
  0x30   :  { %1363 = vmatpush3.bf16.msra.mxu1 %v1362_v35  ;;  %1380 = vmatprep.subr.bf16.mxu0 %v1379_v59  ;;  %v431_v35 = vld [vmem:[%s2294_s5 + $0x8] sm:$0xff]  ;;  %v231_v59 = vld [vmem:[#allocation2 + $0x38] sm:$0xff]  ;;  %v1060_v41 = vld [vmem:[%s2291_s2 + $0x90] sm:$0xff] }
  0x31   :  { %1364 = vmatprep.subr.bf16.mxu1 %v1635_v0  ;;  %v1416_v37 = vpack.c.bf16 %v431_v35, %v430_v34  ;;  %v447_v22 = vld [vmem:[%s2294_s5 + $0x88] sm:$0xff]  ;;  %v1062_v44 = vld [vmem:[%s2291_s2 + $0xa0] sm:$0xff]  ;;  %v1064_v47 = vld [vmem:[%s2291_s2 + $0xb0] sm:$0xff] }
  0x32   :  { %v1066_v50 = vld [vmem:[%s2291_s2 + $0xc0] sm:$0xff]  ;;  %v1068_v53 = vld [vmem:[%s2291_s2 + $0xd0] sm:$0xff] }
  0x33   :  { %1382 = vmatpush1.bf16.msra.mxu0 %v1381_v2  ;;  %v1403_v2 = vpack.c.bf16 %v231_v59, %v229_v58  ;;  %v1070_v56 = vld [vmem:[%s2291_s2 + $0xe0] sm:$0xff]  ;;  %v1072_v59 = vld [vmem:[%s2291_s2 + $0xf0] sm:$0xff] }
  0x34   :  { %1366 = vmatpush3.bf16.msra.mxu1 %v1365_v38  ;;  %1384 = vmatprep.subr.bf16.mxu0 %v1383_v3  ;;  %v433_v38 = vld [vmem:[%s2294_s5 + $0x18] sm:$0xff]  ;;  %v228_v3 = vld [vmem:[#allocation2 + $0x20] sm:$0xff] }
  0x35   :  { %1415 = vmatprep.subr.bf16.mxu1 %v1635_v0  ;;  %v1419_v39 = vpack.c.bf16 %v433_v38, %v432_v36  ;;  %v1405_v7 = vpack.c.bf16 %v230_v4, %v228_v3  ;;  %v1058_v38 = vld [vmem:[%s2291_s2 + $0x80] sm:$0xff]  ;;  %v1078_v4 = vld [vmem:[%s2291_s2 + $0x118] sm:$0xff] }
  0x37   :  { %1386 = vmatpush1.bf16.msra.mxu0 %v1385_v8  ;;  %v1407_v8 = vpack.c.bf16 %v235_v6, %v233_v5  ;;  %v1079_v6 = vld [vmem:[%s2291_s2 + $0x120] sm:$0xff] }
  0x38   :  { %1388 = vmatprep.subr.bf16.mxu0 %v1387_v9  ;;  %v232_v9 = vld [vmem:[#allocation2 + $0x40] sm:$0xff] }
  0x39   :  { %v1409_v13 = vpack.c.bf16 %v234_v10, %v232_v9  ;;  %v1081_v9 = vld [vmem:[%s2291_s2 + $0x130] sm:$0xff]  ;;  %v1082_v10 = vld [vmem:[%s2291_s2 + $0x138] sm:$0xff] }
  0x3b   :  { %1390 = vmatpush1.bf16.msra.mxu0 %v1389_v14  ;;  %v1411_v14 = vpack.c.bf16 %v239_v12, %v237_v11  ;;  %v1476_v11 = vpack.c.bf16 %v1082_v10, %v1081_v9  ;;  %v1083_v12 = vld [vmem:[%s2291_s2 + $0x140] sm:$0xff]  ;;  %v1114_v10 = vld [vmem:[%s2293_s4 + $0x1b0] sm:$0xff] }
  0x3c   :  { %1392 = vmatprep.subr.bf16.mxu0 %v1391_v15  ;;  %v236_v15 = vld [vmem:[#allocation2 + $0x60] sm:$0xff] }
  0x3d   :  { %v1413_v17 = vpack.c.bf16 %v238_v16, %v236_v15  ;;  %v1085_v15 = vld [vmem:[%s2291_s2 + $0x150] sm:$0xff]  ;;  %v1086_v16 = vld [vmem:[%s2291_s2 + $0x158] sm:$0xff]  ;;  %v1112_v9 = vld [vmem:[%s2293_s4 + $0x1a0] sm:$0xff] }
  0x3f   :  { %1394 = vmatpush1.bf16.msra.mxu0 %v1393_v20  ;;  %v1437_v20 = vpack.c.bf16 %v445_v19, %v444_v18  ;;  %v1087_v18 = vld [vmem:[%s2291_s2 + $0x160] sm:$0xff]  ;;  %v1088_v19 = vld [vmem:[%s2291_s2 + $0x168] sm:$0xff] }
  0x40   :  { %1396 = vmatprep.subr.bf16.mxu0 %v1395_v21  ;;  %v446_v21 = vld [vmem:[%s2294_s5 + $0x80] sm:$0xff] }
  0x41   :  { %v1440_v23 = vpack.c.bf16 %v447_v22, %v446_v21  ;;  %v1055_v21 = vld [vmem:[%s2295_s6 + $0x2] ss:$0 sm:$0xff] }
  0x43   :  { %1398 = vmatpush1.bf16.msra.mxu0 %v1397_v24  ;;  %v416_v24 = vlaneseq }
  0x44   :  { %1400 = vmatprep.subr.bf16.mxu0 %v1399_v33 }
  0xf9   :  { %v128_v27 = vpop.f32.mrb[0].mxu0 }
  0xfa   :  { %v129_v28 = vadd.f32 %v1051_v25, %v128_v27  ;;  %v1225_v29 = vpop.f32.mrb[1].mxu0  ;;  %v1965_v25 = vshrl.u32 %v416_v24, 7 }
  0xfc   :  { %v132_v30 = vmax.f32 %v129_v28, 0.0  ;;  %v418_v27 = vsub.s32 0, %v1965_v25  ;;  %v414_v28 = vld [vmem:[%s2296_s7] ss:$2 sm:$0x3]  ;;  %v422_v29 = vsub.s32 1, %v1965_v25 }
  0xfd   :  { %v1144_v25 = vld [vmem:[%s2295_s6 + $0x5] ss:$0 sm:$0xff] }
  0xfe   :  { %1259 = vmatmul.mubr.f32.vlgmr.msra.gmra.mrb[0].mxu1 %v132_v30  ;;  %v419_v30 = vrot.slane %v414_v28, %v418_v27  ;;  %v423_v31 = vrot.slane %v414_v28, %v422_v29 }
  0xff   :  { %1417 = vmatpush1.bf16.msra.mxu1 %v1416_v37 }
 0x100   :  { %1418 = vmatprep.subr.bf16.mxu1 %v1635_v0 }
 0x103   :  { %1420 = vmatpush1.bf16.msra.mxu1 %v1419_v39  ;;  %v1059_v39 = vld [vmem:[%s2291_s2 + $0x88] sm:$0xff] }
 0x104   :  { %1421 = vmatprep.subr.bf16.mxu1 %v1635_v0  ;;  %v1443_v40 = vpack.c.bf16 %v1059_v39, %v1058_v38  ;;  %v1093_v38 = vld [vmem:[%s2293_s4 + $0x108] sm:$0xff]  ;;  %v1095_v39 = vld [vmem:[%s2293_s4 + $0x118] sm:$0xff] }
 0x107   :  { %1423 = vmatpush1.bf16.msra.mxu1 %v1422_v42  ;;  %v1061_v42 = vld [vmem:[%s2291_s2 + $0x98] sm:$0xff] }
 0x108   :  { %1424 = vmatprep.subr.bf16.mxu1 %v1635_v0  ;;  %v1446_v43 = vpack.c.bf16 %v1061_v42, %v1060_v41  ;;  %v1490_v41 = vpack.c.bf16 %v1095_v39, %v1093_v38  ;;  %v1094_v42 = vld [vmem:[%s2293_s4 + $0x110] sm:$0xff]  ;;  %v1127_v39 = vld [vmem:[%s2294_s5 + $0x98] sm:$0xff] }
 0x109   :  { %v1126_v38 = vld [vmem:[%s2294_s5 + $0x90] sm:$0xff] }
 0x10b   :  { %1426 = vmatpush1.bf16.msra.mxu1 %v1425_v45  ;;  %v1063_v45 = vld [vmem:[%s2291_s2 + $0xa8] sm:$0xff] }
 0x10c   :  { %1427 = vmatprep.subr.bf16.mxu1 %v1635_v0  ;;  %v1449_v46 = vpack.c.bf16 %v1063_v45, %v1062_v44  ;;  %v1099_v44 = vld [vmem:[%s2293_s4 + $0x138] sm:$0xff] }
 0x10f   :  { %1429 = vmatpush1.bf16.msra.mxu1 %v1428_v48  ;;  %v1065_v48 = vld [vmem:[%s2291_s2 + $0xb8] sm:$0xff] }
 0x110   :  { %1430 = vmatprep.subr.bf16.mxu1 %v1635_v0  ;;  %v1452_v49 = vpack.c.bf16 %v1065_v48, %v1064_v47  ;;  %v1096_v47 = vld [vmem:[%s2293_s4 + $0x120] sm:$0xff]  ;;  %v1098_v48 = vld [vmem:[%s2293_s4 + $0x130] sm:$0xff] }
 0x113   :  { %1432 = vmatpush1.bf16.msra.mxu1 %v1431_v51  ;;  %v1067_v51 = vld [vmem:[%s2291_s2 + $0xc8] sm:$0xff] }
 0x114   :  { %1433 = vmatprep.subr.bf16.mxu1 %v1635_v0  ;;  %v1455_v52 = vpack.c.bf16 %v1067_v51, %v1066_v50  ;;  %v1103_v50 = vld [vmem:[%s2293_s4 + $0x158] sm:$0xff]  ;;  %v1496_v51 = vpack.c.bf16 %v1098_v48, %v1096_v47  ;;  %v1132_v47 = vld [vmem:[%s2294_s5 + $0xc0] sm:$0xff]  ;;  %v1133_v48 = vld [vmem:[%s2294_s5 + $0xc8] sm:$0xff] }
 0x117   :  { %1435 = vmatpush1.bf16.msra.mxu1 %v1434_v54  ;;  %v1069_v54 = vld [vmem:[%s2291_s2 + $0xd8] sm:$0xff] }
 0x118   :  { %1436 = vmatprep.subr.bf16.mxu1 %v1635_v0  ;;  %v1458_v55 = vpack.c.bf16 %v1069_v54, %v1068_v53  ;;  %v1100_v53 = vld [vmem:[%s2293_s4 + $0x140] sm:$0xff]  ;;  %v1102_v54 = vld [vmem:[%s2293_s4 + $0x150] sm:$0xff] }
 0x11b   :  { %1438 = vmatpush1.bf16.msra.mxu1 %v1437_v20  ;;  %v1485_v20 = vpack.c.bf16 %v1088_v19, %v1087_v18  ;;  %v1123_v18 = vld [vmem:[%s2293_s4 + $0x1f8] sm:$0xff] }
 0x11c   :  { %1439 = vmatprep.subr.bf16.mxu1 %v1635_v0 }
 0x11f   :  { %1441 = vmatpush1.bf16.msra.mxu1 %v1440_v23 }
 0x120   :  { %1466 = vmatprep.subr.bf16.mxu1 %v1635_v0 }
 0x1d1   :  { %v220_v60 = vpop.f32.mrb[0].mxu1 }
 0x1d2   :  { %v221_v62 = vadd.f32 %v1053_v57, %v220_v60  ;;  %v1260_v63 = vpop.f32.mrb[1].mxu1  ;;  %v1071_v57 = vld [vmem:[%s2291_s2 + $0xe8] sm:$0xff]  ;;  %v1073_v60 = vld [vmem:[%s2291_s2 + $0xf8] sm:$0xff] }
 0x1d3   :  { %v1461_v58 = vpack.c.bf16 %v1071_v57, %v1070_v56  ;;  %v1076_v63 = vld [vmem:[%s2291_s2 + $0x108] sm:$0xff]  ;;  %v1107_v56 = vld [vmem:[%s2293_s4 + $0x178] sm:$0xff]  ;;  %v1500_v57 = vpack.c.bf16 %v1102_v54, %v1100_v53  ;;  %v1136_v53 = vld [vmem:[%s2294_s5 + $0xe0] sm:$0xff] }
 0x1d4   :  { %337 = vmatmul.mubr.f32.vlgmr.msra.gmra.mrb[2].mxu0 %v221_v62  ;;  %v1075_v62 = vld [vmem:[%s2291_s2 + $0x100] sm:$0xff]  ;;  %v1137_v54 = vld [vmem:[%s2294_s5 + $0xe8] sm:$0xff] }
 0x1d5   :  { %1402 = vmatpush1.bf16.msra.mxu0 %v1401_v61  ;;  %407 = vmatprep.mubr.f32.mxu0 %v1637_v1  ;;  %v1464_v61 = vpack.c.bf16 %v1073_v60, %v1072_v59  ;;  %v1467_v3 = vpack.c.bf16 %v1076_v63, %v1075_v62  ;;  %v1104_v59 = vld [vmem:[%s2293_s4 + $0x160] sm:$0xff]  ;;  %v1106_v60 = vld [vmem:[%s2293_s4 + $0x170] sm:$0xff]  ;;  %v1111_v62 = vld [vmem:[%s2293_s4 + $0x198] sm:$0xff] }
 0x1d6   :  { %1404 = vmatprep.subr.bf16.mxu0 %v1403_v2  ;;  %v1077_v2 = vld [vmem:[%s2291_s2 + $0x110] sm:$0xff]  ;;  %v1504_v63 = vpack.c.bf16 %v1106_v60, %v1104_v59  ;;  %v720_v59 = vld [vmem:[#allocation2 + $0x80] sm:$0xff] }
 0x1d7   :  { %v1470_v5 = vpack.c.bf16 %v1078_v4, %v1077_v2  ;;  %v1110_v4 = vld [vmem:[%s2293_s4 + $0x190] sm:$0xff] }
 0x1d8   :  { %v722_v60 = vld [vmem:[#allocation2 + $0x90] sm:$0xff] }
 0x1d9   :  { %1406 = vmatpush1.bf16.msra.mxu0 %v1405_v7  ;;  %v1080_v7 = vld [vmem:[%s2291_s2 + $0x128] sm:$0xff] }
 0x1da   :  { %1408 = vmatprep.subr.bf16.mxu0 %v1407_v8  ;;  %v1473_v8 = vpack.c.bf16 %v1080_v7, %v1079_v6  ;;  %v1115_v6 = vld [vmem:[%s2293_s4 + $0x1b8] sm:$0xff] }
 0x1dd   :  { %1410 = vmatpush1.bf16.msra.mxu0 %v1409_v13  ;;  %v1084_v13 = vld [vmem:[%s2291_s2 + $0x148] sm:$0xff] }
 0x1de   :  { %1412 = vmatprep.subr.bf16.mxu0 %v1411_v14  ;;  %v1479_v14 = vpack.c.bf16 %v1084_v13, %v1083_v12  ;;  %v1119_v12 = vld [vmem:[%s2293_s4 + $0x1d8] sm:$0xff]  ;;  %v1512_v13 = vpack.c.bf16 %v1114_v10, %v1112_v9  ;;  %v729_v9 = vld [vmem:[#allocation2 + $0xc8] sm:$0xff] }
 0x1df   :  { %v731_v10 = vld [vmem:[#allocation2 + $0xd8] sm:$0xff] }
 0x1e1   :  { %1414 = vmatpush1.bf16.msra.mxu0 %v1413_v17  ;;  %v1482_v17 = vpack.c.bf16 %v1086_v16, %v1085_v15  ;;  %v1116_v15 = vld [vmem:[%s2293_s4 + $0x1c0] sm:$0xff]  ;;  %v1118_v16 = vld [vmem:[%s2293_s4 + $0x1d0] sm:$0xff] }
 0x1e2   :  { %1442 = vmatprep.subr.bf16.mxu0 %v1635_v0  ;;  %v1516_v19 = vpack.c.bf16 %v1118_v16, %v1116_v15  ;;  %v733_v15 = vld [vmem:[#allocation2 + $0xe8] sm:$0xff]  ;;  %v735_v16 = vld [vmem:[#allocation2 + $0xf8] sm:$0xff] }
 0x1e4   :  { %1054 = vmatmul.mubr.msk.f32.vlgmr.msra.gmra.mrb[2].mxu0 %vm58_vm1, %v1758_v26 }
 0x1e5   :  { %1293 = vmatprep.mubr.msk.f32.mxu0 %vm1636_vm0, %v1637_v1  ;;  %1444 = vmatpush3.bf16.msra.mxu0 %v1443_v40  ;;  %v1092_v40 = vld [vmem:[%s2293_s4 + $0x100] sm:$0xff] }
 0x1e6   :  { %1445 = vmatprep.subr.bf16.mxu0 %v1635_v0  ;;  %v1492_v45 = vpack.c.bf16 %v1094_v42, %v1092_v40  ;;  %v1128_v40 = vld [vmem:[%s2294_s5 + $0xa0] sm:$0xff]  ;;  %v1129_v42 = vld [vmem:[%s2294_s5 + $0xa8] sm:$0xff] }
 0x1e9   :  { %1447 = vmatpush3.bf16.msra.mxu0 %v1446_v43  ;;  %v1097_v43 = vld [vmem:[%s2293_s4 + $0x128] sm:$0xff] }
 0x1ea   :  { %1448 = vmatprep.subr.bf16.mxu0 %v1635_v0 }
 0x1ed   :  { %1450 = vmatpush3.bf16.msra.mxu0 %v1449_v46  ;;  %v1494_v46 = vpack.c.bf16 %v1099_v44, %v1097_v43  ;;  %v1542_v43 = vpack.c.bf16 %v1129_v42, %v1128_v40  ;;  %v1130_v44 = vld [vmem:[%s2294_s5 + $0xb0] sm:$0xff] }
 0x1ee   :  { %1451 = vmatprep.subr.bf16.mxu0 %v1635_v0 }
 0x1f1   :  { %1453 = vmatpush3.bf16.msra.mxu0 %v1452_v49  ;;  %v1101_v49 = vld [vmem:[%s2293_s4 + $0x148] sm:$0xff] }
 0x1f2   :  { %1454 = vmatprep.subr.bf16.mxu0 %v1635_v0 }
 0x1f5   :  { %1456 = vmatpush3.bf16.msra.mxu0 %v1455_v52  ;;  %v1498_v52 = vpack.c.bf16 %v1103_v50, %v1101_v49  ;;  %v1548_v49 = vpack.c.bf16 %v1133_v48, %v1132_v47  ;;  %v1134_v50 = vld [vmem:[%s2294_s5 + $0xd0] sm:$0xff] }
 0x1f6   :  { %1457 = vmatprep.subr.bf16.mxu0 %v1635_v0 }
 0x1f9   :  { %1459 = vmatpush3.bf16.msra.mxu0 %v1458_v55  ;;  %v1105_v55 = vld [vmem:[%s2293_s4 + $0x168] sm:$0xff] }
 0x1fa   :  { %1460 = vmatprep.subr.bf16.mxu0 %v1635_v0 }
 0x1fd   :  { %1462 = vmatpush3.bf16.msra.mxu0 %v1461_v58  ;;  %v1502_v58 = vpack.c.bf16 %v1107_v56, %v1105_v55  ;;  %v1554_v55 = vpack.c.bf16 %v1137_v54, %v1136_v53  ;;  %v1138_v56 = vld [vmem:[%s2294_s5 + $0xf0] sm:$0xff] }
 0x1fe   :  { %1463 = vmatprep.subr.bf16.mxu0 %v1635_v0 }
 0x201   :  { %1465 = vmatpush3.bf16.msra.mxu0 %v1464_v61  ;;  %v1109_v61 = vld [vmem:[%s2293_s4 + $0x188] sm:$0xff] }
 0x202   :  { %1491 = vmatprep.subr.bf16.mxu0 %v1490_v41  ;;  %v1506_v2 = vpack.c.bf16 %v1111_v62, %v1109_v61  ;;  %v1539_v41 = vpack.c.bf16 %v1127_v39, %v1126_v38  ;;  %v1091_v61 = vld [vmem:[%s2295_s6 + $0x4] ss:$0 sm:$0xff]  ;;  %v725_v62 = vld [vmem:[#allocation2 + $0xa8] sm:$0xff] }
 0x2b7   :  { %v409_v32 = vpop.f32.mrb[2].mxu0 }
 0x2b8   :  { %v426_v33 = vadd.f32 %v419_v30, %v409_v32  ;;  %v411_v34 = vpop.f32.mrb[3].mxu0 }
 0x2b9   :  { %v427_v35 = vadd.f32 %v423_v31, %v411_v34 }
 0x2ba   :  { %v428_v37 = vmax.f32 %v426_v33, 0.0 }
 0x2bb   :  { %v429_v36 = vmax.f32 %v427_v35, 0.0  ;;  %v1089_v35 = vld [vmem:[%s2291_s2 + $0x170] sm:$0xff] }
 0x2bd   :  { %1056 = vmatprep.mubr.msk.f32.mxu1 %vm453_vm2, %v429_v36  ;;  %v1090_v36 = vld [vmem:[%s2291_s2 + $0x178] sm:$0xff] }
 0x2be   :  { %522 = vmatmul.mubr.f32.vlgmr.msra.gmra.mrb[2].mxu1 %v428_v37  ;;  %v1488_v37 = vpack.c.bf16 %v1090_v36, %v1089_v35  ;;  %v721_v35 = vld [vmem:[#allocation2 + $0x88] sm:$0xff]  ;;  %v723_v36 = vld [vmem:[#allocation2 + $0x98] sm:$0xff] }
 0x2bf   :  { %1328 = vmatprep.mubr.msk.f32.mxu1 %vm1636_vm0, %v1637_v1  ;;  %1468 = vmatpush3.bf16.msra.mxu1 %v1467_v3  ;;  %v1108_v3 = vld [vmem:[%s2293_s4 + $0x180] sm:$0xff] }
 0x2c0   :  { %1469 = vmatprep.subr.bf16.mxu1 %v1635_v0  ;;  %v1508_v7 = vpack.c.bf16 %v1110_v4, %v1108_v3  ;;  %v1524_v3 = vpack.c.bf16 %v722_v60, %v720_v59 }
 0x2c3   :  { %1471 = vmatpush3.bf16.msra.mxu1 %v1470_v5  ;;  %v1113_v5 = vld [vmem:[%s2293_s4 + $0x1a8] sm:$0xff] }
 0x2c4   :  { %1472 = vmatprep.subr.bf16.mxu1 %v1635_v0 }
 0x2c7   :  { %1474 = vmatpush3.bf16.msra.mxu1 %v1473_v8  ;;  %v1510_v8 = vpack.c.bf16 %v1115_v6, %v1113_v5 }
 0x2c8   :  { %1475 = vmatprep.subr.bf16.mxu1 %v1635_v0 }
 0x2cb   :  { %1477 = vmatpush3.bf16.msra.mxu1 %v1476_v11  ;;  %v1117_v11 = vld [vmem:[%s2293_s4 + $0x1c8] sm:$0xff] }
 0x2cc   :  { %1478 = vmatprep.subr.bf16.mxu1 %v1635_v0 }
 0x2cf   :  { %1480 = vmatpush3.bf16.msra.mxu1 %v1479_v14  ;;  %v1514_v14 = vpack.c.bf16 %v1119_v12, %v1117_v11  ;;  %v1530_v12 = vpack.c.bf16 %v731_v10, %v729_v9 }
 0x2d0   :  { %1481 = vmatprep.subr.bf16.mxu1 %v1635_v0 }
 0x2d3   :  { %1483 = vmatpush3.bf16.msra.mxu1 %v1482_v17  ;;  %v1121_v17 = vld [vmem:[%s2293_s4 + $0x1e8] sm:$0xff] }
 0x2d4   :  { %1484 = vmatprep.subr.bf16.mxu1 %v1635_v0 }
 0x2d7   :  { %1486 = vmatpush3.bf16.msra.mxu1 %v1485_v20  ;;  %v1518_v20 = vpack.c.bf16 %v1123_v18, %v1121_v17  ;;  %v1534_v18 = vpack.c.bf16 %v735_v16, %v733_v15 }
 0x2d8   :  { %1487 = vmatprep.subr.bf16.mxu1 %v1635_v0 }
 0x2db   :  { %1489 = vmatpush3.bf16.msra.mxu1 %v1488_v37  ;;  %v1522_v37 = vpack.c.bf16 %v723_v36, %v721_v35 }
 0x2dc   :  { %1538 = vmatprep.subr.bf16.mxu1 %v1635_v0 }
 0x391   :  { %v523_v22 = vpop.f32.mrb[2].mxu1 }
 0x392   :  { %v2086_v23 = vadd.f32 %v1055_v21, %v523_v22  ;;  %v525_v28 = vpop.f32.mrb[3].mxu1  ;;  %v1120_v21 = vld [vmem:[%s2293_s4 + $0x1e0] sm:$0xff]  ;;  %v1122_v22 = vld [vmem:[%s2293_s4 + $0x1f0] sm:$0xff] }
 0x393   :  { %v1520_v28 = vpack.c.bf16 %v1122_v22, %v1120_v21  ;;  %v1141_v22 = vld [vmem:[%s2294_s5 + $0x108] sm:$0xff] }
 0x394   :  { %v1057_v30 = vmul.f32 -10.0, %v2086_v23  ;;  %v1146_v40 = vmul.f32 -1.442695, %v2086_v23 }
 0x396   :  { %v529_v31 = vmul.f32 1.442695, %v1057_v30  ;;  %v1074_v30 = vld [vmem:[%s2295_s6 + $0x3] ss:$0 sm:$0xff] }
 0x398   :  { %1576 = vpow2.f32 %v529_v31 }
 0x3a2   :  { %v1577_v32 = vpop.eup %1576 }
 0x3a3   :  { %v531_v33 = vadd.f32 1.0, %v1577_v32 }
 0x3a5   :  { %1578 = vrcp.f32 %v531_v33 }
 0x3a6   :  { %1580 = vpow2.f32 %v1146_v40 }
 0x3af   :  { %v1579_v34 = vpop.eup %1578 }
 0x3b0   :  { %1294 = vmatmul.mubr.f32.vlgmr.msra.gmra.mrb[4].mxu0 %v1579_v34 }
 0x3b1   :  { %833 = vmatprep.mubr.f32.mxu0 %v1637_v1  ;;  %1493 = vmatpush1.bf16.msra.mxu0 %v1492_v45  ;;  %v1131_v45 = vld [vmem:[%s2294_s5 + $0xb8] sm:$0xff] }
 0x3b2   :  { %1495 = vmatprep.subr.bf16.mxu0 %v1494_v46  ;;  %v1545_v46 = vpack.c.bf16 %v1131_v45, %v1130_v44 }
 0x3b5   :  { %1497 = vmatpush1.bf16.msra.mxu0 %v1496_v51  ;;  %v1135_v51 = vld [vmem:[%s2294_s5 + $0xd8] sm:$0xff] }
 0x3b6   :  { %1499 = vmatprep.subr.bf16.mxu0 %v1498_v52  ;;  %v1551_v52 = vpack.c.bf16 %v1135_v51, %v1134_v50 }
 0x3b9   :  { %1501 = vmatpush1.bf16.msra.mxu0 %v1500_v57  ;;  %v1139_v57 = vld [vmem:[%s2294_s5 + $0xf8] sm:$0xff] }
 0x3ba   :  { %1503 = vmatprep.subr.bf16.mxu0 %v1502_v58  ;;  %v1557_v58 = vpack.c.bf16 %v1139_v57, %v1138_v56 }
 0x3bd   :  { %1505 = vmatpush1.bf16.msra.mxu0 %v1504_v63  ;;  %v727_v63 = vld [vmem:[#allocation2 + $0xb8] sm:$0xff] }
 0x3be   :  { %1507 = vmatprep.subr.bf16.mxu0 %v1506_v2  ;;  %v1526_v6 = vpack.c.bf16 %v727_v63, %v725_v62 }
 0x3c1   :  { %1509 = vmatpush1.bf16.msra.mxu0 %v1508_v7  ;;  %v724_v7 = vld [vmem:[#allocation2 + $0xa0] sm:$0xff] }
 0x3c2   :  { %1511 = vmatprep.subr.bf16.mxu0 %v1510_v8  ;;  %v726_v8 = vld [vmem:[#allocation2 + $0xb0] sm:$0xff] }
 0x3c3   :  { %v1528_v11 = vpack.c.bf16 %v726_v8, %v724_v7 }
 0x3c5   :  { %1513 = vmatpush1.bf16.msra.mxu0 %v1512_v13  ;;  %v728_v13 = vld [vmem:[#allocation2 + $0xc0] sm:$0xff] }
 0x3c6   :  { %1515 = vmatprep.subr.bf16.mxu0 %v1514_v14  ;;  %v730_v14 = vld [vmem:[#allocation2 + $0xd0] sm:$0xff] }
 0x3c7   :  { %v1532_v17 = vpack.c.bf16 %v730_v14, %v728_v13 }
 0x3c9   :  { %1517 = vmatpush1.bf16.msra.mxu0 %v1516_v19  ;;  %v732_v19 = vld [vmem:[#allocation2 + $0xe0] sm:$0xff] }
 0x3ca   :  { %1519 = vmatprep.subr.bf16.mxu0 %v1518_v20  ;;  %v734_v20 = vld [vmem:[#allocation2 + $0xf0] sm:$0xff] }
 0x3cb   :  { %v1536_v21 = vpack.c.bf16 %v734_v20, %v732_v19 }
 0x3cd   :  { %1521 = vmatpush1.bf16.msra.mxu0 %v1520_v28 }
 0x3ce   :  { %1523 = vmatprep.subr.bf16.mxu0 %v1522_v37 }
 0x483   :  { %v622_v31 = vpop.f32.mrb[4].mxu0 }
 0x484   :  { %v623_v32 = vadd.f32 %v1074_v30, %v622_v31  ;;  %v1295_v33 = vpop.f32.mrb[5].mxu0  ;;  %v1142_v30 = vld [vmem:[%s2294_s5 + $0x110] sm:$0xff] }
 0x486   :  { %v626_v34 = vmax.f32 %v623_v32, 0.0  ;;  %v1125_v32 = vld [vmem:[%s2296_s7 + $0x1] ss:$2 sm:$0x3] }
 0x487   :  { %v917_v33 = vrot.slane %v1125_v32, %v418_v27  ;;  %v1026_v27 = vand.u32 127, %v416_v24 }
 0x488   :  { %1329 = vmatmul.mubr.f32.vlgmr.msra.gmra.mrb[4].mxu1 %v626_v34 }
 0x489   :  { %1540 = vmatpush1.bf16.msra.mxu1 %v1539_v41  ;;  %v1581_v41 = vpop.eup %1580  ;;  %vm1027_vm3 = vcmp.eq.s32.totalorder %v1026_v27, 24 }
 0x48a   :  { %1541 = vmatprep.subr.bf16.mxu1 %v1635_v0  ;;  %v1031_v42 = vadd.f32 1.0, %v1581_v41 }
 0x48c   :  { %1582 = vrcp.f32 %v1031_v42 }
 0x48d   :  { %1543 = vmatpush1.bf16.msra.mxu1 %v1542_v43 }
 0x48e   :  { %1544 = vmatprep.subr.bf16.mxu1 %v1635_v0 }
 0x491   :  { %1546 = vmatpush1.bf16.msra.mxu1 %v1545_v46 }
 0x492   :  { %1547 = vmatprep.subr.bf16.mxu1 %v1635_v0 }
 0x495   :  { %1549 = vmatpush1.bf16.msra.mxu1 %v1548_v49 }
 0x496   :  { %1550 = vmatprep.subr.bf16.mxu1 %v1635_v0  ;;  %v1583_v45 = vpop.eup %1582 }
 0x499   :  { %1552 = vmatpush1.bf16.msra.mxu1 %v1551_v52 }
 0x49a   :  { %1553 = vmatprep.subr.bf16.mxu1 %v1635_v0 }
 0x49d   :  { %1555 = vmatpush1.bf16.msra.mxu1 %v1554_v55 }
 0x49e   :  { %1556 = vmatprep.subr.bf16.mxu1 %v1635_v0 }
 0x4a1   :  { %1558 = vmatpush1.bf16.msra.mxu1 %v1557_v58 }
 0x4a2   :  { %1559 = vmatprep.subr.bf16.mxu1 %v1635_v0 }
 0x55b   :  { %v715_v2 = vpop.f32.mrb[4].mxu1 }
 0x55c   :  { %v716_v4 = vadd.f32 %v1091_v61, %v715_v2  ;;  %v1330_v5 = vpop.f32.mrb[5].mxu1 }
 0x55e   :  { %834 = vmatmul.mubr.f32.vlgmr.msra.gmra.mrb[6].mxu0 %v716_v4 }
 0x55f   :  { %1525 = vmatpush1.bf16.msra.mxu0 %v1524_v3  ;;  %904 = vmatprep.mubr.f32.mxu0 %v1637_v1  ;;  %v1140_v1 = vld [vmem:[%s2294_s5 + $0x100] sm:$0xff] }
 0x560   :  { %1527 = vmatprep.subr.bf16.mxu0 %v1526_v6  ;;  %v1560_v28 = vpack.c.bf16 %v1141_v22, %v1140_v1 }
 0x562   :  { %1561 = vmatpush1.bf16.msra.mxu1 %v1560_v28 }
 0x563   :  { %1529 = vmatpush1.bf16.msra.mxu0 %v1528_v11  ;;  %1562 = vmatprep.subr.bf16.mxu1 %v1635_v0  ;;  %v921_v0 = vrot.slane %v1125_v32, %v422_v29 }
 0x564   :  { %1531 = vmatprep.subr.bf16.mxu0 %v1530_v12 }
 0x567   :  { %1533 = vmatpush1.bf16.msra.mxu0 %v1532_v17 }
 0x568   :  { %1535 = vmatprep.subr.bf16.mxu0 %v1534_v18 }
 0x56b   :  { %1537 = vmatpush1.bf16.msra.mxu0 %v1536_v21 }
 0x56e   :  { %1124 = vmatmul.mubr.msk.f32.vlgmr.msra.gmra.mrb[6].mxu0 %vm58_vm1, %v1758_v26  ;;  %v1143_v26 = vld [vmem:[%s2294_s5 + $0x118] sm:$0xff] }
 0x56f   :  { %v1563_v31 = vpack.c.bf16 %v1143_v26, %v1142_v30 }
 0x571   :  { %1564 = vmatpush1.bf16.msra.mxu1 %v1563_v31 }
 0x641   :  { %v906_v34 = vpop.f32.mrb[6].mxu0 }
 0x642   :  { %v924_v35 = vadd.f32 %v917_v33, %v906_v34  ;;  %v908_v36 = vpop.f32.mrb[7].mxu0 }
 0x643   :  { %v925_v37 = vadd.f32 %v921_v0, %v908_v36 }
 0x644   :  { %v926_v39 = vmax.f32 %v924_v35, 0.0 }
 0x645   :  { %v927_v38 = vmax.f32 %v925_v37, 0.0 }
 0x647   :  { %1145 = vmatprep.mubr.msk.f32.mxu1 %vm453_vm2, %v927_v38 }
 0x648   :  { %1020 = vmatmul.mubr.f32.vlgmr.msra.gmra.mrb[6].mxu1 %v926_v39 }
 0x71b   :  { %v1021_v29 = vpop.f32.mrb[6].mxu1 }
 0x71c   :  { %v1022_v43 = vadd.f32 %v1144_v25, %v1021_v29  ;;  %v1023_v44 = vpop.f32.mrb[7].mxu1 }
 0x71e   :  { %v1034_v46 = vsel %vm1027_vm3, %v1022_v43, %v1583_v45 }
 0x71f   :  { %1035 = vst [vmem:[#allocation5] sm:$0xff] %v1034_v46 }
 0x720   :  { %1617 = shalt.err (!%p1614_p12)
}
 0x721   :  { %s1618_s6 = scalar_lea.hbm %s2297_s8, 128 }
 0x722   :  { %p1619_p13 = scmp.ne.s32.totalorder %s2297_s8, %s1618_s6  ;;  %p1622_p0 = scmp.lt.u32.totalorder %s1618_s6, %s2297_s8 }
 0x724   :  { %p1624_p1 = pnand %p1622_p0, %p1619_p13 }
 0x726   :  { %1627 = shalt.err (!%p1624_p1)
}
 0x727   :  { %1045 = dma.vmem_to_hbm [thread:$0]  %s1043_s19, 128, %s2297_s8, [#allocation4]  }
 0x728   :  { %1630 = dma.done.wait [#allocation4], 128  }
 0x729   :  { %1631 = vsyncadd [#allocation4], 4294967168 }
 0x72a   :  { %1049 = vsyncpa [#allocation3], 1 }
 0x72b   :  { %1050 = vsyncpa [#allocation4], 1 }

</bundles_post_ra>
